<compile_context>
chip_gen: v7x
topology: tpu7x:2x2x1
jax: 0.10.0
libtpu: 0.0.40
codegen_flags: <defaults>
</compile_context>

<pallas_src>
import jax
import jax.numpy as jnp
from jax.experimental import pallas as pl
from jax.experimental.pallas import tpu as pltpu

INPUT_SIZE = 784
HIDDEN_SIZE = 256
NUM_CLASSES = 10

OUT_PAD = 128    # lane-dense padded class dim (sliced back to 10 in the wrapper)
TB_MAX = 512     # batch tile: ~85% of HBM roofline per measured mem-bound tiling data


def _round_up(n, m):
    return ((n + m - 1) // m) * m


def _select_tile(b):
    """Pick the batch tile (rows per grid step)."""
    if b <= 256:
        # Small batch: single tile, rounded to 16 for bf16 sublane packing.
        return _round_up(b, 16)
    if b >= 2 * TB_MAX:
        return TB_MAX
    # Mid-range: force >= 2 tiles so the "parallel" batch axis actually shards
    # across v7x's two TensorCores (keep the tile a multiple of 128).
    return min(TB_MAX, _round_up(-(-b // 2), 128))


def prepare_params(w1, b1, w2, b2):
    """One-time layout prep (do this at init, NOT per forward call).

    w1 -> bf16 (784, 256); b1 -> f32 (1, 256);
    w2 -> f32 (256, 128) zero-padded; b2 -> f32 (1, 128) zero-padded.
    """
    w1_p = jnp.asarray(w1, jnp.bfloat16).reshape(INPUT_SIZE, HIDDEN_SIZE)
    b1_p = jnp.asarray(b1, jnp.float32).reshape(1, HIDDEN_SIZE)
    w2_p = jnp.zeros((HIDDEN_SIZE, OUT_PAD), jnp.float32).at[:, :NUM_CLASSES].set(
        jnp.asarray(w2, jnp.float32).reshape(HIDDEN_SIZE, NUM_CLASSES))
    b2_p = jnp.zeros((1, OUT_PAD), jnp.float32).at[:, :NUM_CLASSES].set(
        jnp.asarray(b2, jnp.float32).reshape(1, NUM_CLASSES))
    return w1_p, b1_p, w2_p, b2_p


def mlp_kernel(x_ref, w1_ref, b1_ref, w2_ref, b2_ref, o_ref):
    # Layer 1: cast the streamed f32 x tile to bf16 on the VPU (HBM DMA is the binding
    # resource, not VLIW slots), MXU matmul with f32 accumulation, bias + ReLU in f32.
    x_bf16 = x_ref[...].astype(jnp.bfloat16)                    # (TB, 784)
    h = jnp.dot(x_bf16, w1_ref[...], preferred_element_type=jnp.float32)
    h = jnp.maximum(h + b1_ref[...], 0.0)                       # (TB, 256) f32
    # Layer 2: tiny (256x128) -> keep fully f32 for near-f32-accurate logits.
    out = jnp.dot(h, w2_ref[...], preferred_element_type=jnp.float32)
    o_ref[...] = out + b2_ref[...]                               # (TB, 128) lane-dense store


def simple_mlp_forward(x, prepared_params, *, tb=None):
    """x: (B, 784) f32; prepared_params: output of prepare_params(). Returns (B, 10) f32."""
    w1_p, b1_p, w2_p, b2_p = prepared_params
    B, K = x.shape
    assert K == INPUT_SIZE

    if tb is None:
        tb = _select_tile(B)
    Bp = _round_up(B, tb)
    x_p = x if Bp == B else jnp.pad(x, ((0, Bp - B), (0, 0)))   # batch-only pad (usually 0)

    n_tiles = Bp // tb
    flops = 2 * Bp * (INPUT_SIZE * HIDDEN_SIZE + HIDDEN_SIZE * OUT_PAD)
    bytes_accessed = (Bp * INPUT_SIZE * 4            # x (f32 streamed)
                      + w1_p.size * 2                # w1 bf16
                      + w2_p.size * 4 + b1_p.size * 4 + b2_p.size * 4
                      + Bp * OUT_PAD * 4)            # output f32

    out_padded = pl.pallas_call(
        mlp_kernel,
        out_shape=jax.ShapeDtypeStruct((Bp, OUT_PAD), jnp.float32),
        grid=(n_tiles,),
        in_specs=[
            # x tiles stream through the pipeline (double-buffered); 784 == full dim.
            pl.BlockSpec((tb, INPUT_SIZE), lambda i: (i, 0)),
            # Weights / biases: constant index_map -> fetched once, VMEM-resident.
            pl.BlockSpec((INPUT_SIZE, HIDDEN_SIZE), lambda i: (0, 0)),
            pl.BlockSpec((1, HIDDEN_SIZE), lambda i: (0, 0)),
            pl.BlockSpec((HIDDEN_SIZE, OUT_PAD), lambda i: (0, 0)),
            pl.BlockSpec((1, OUT_PAD), lambda i: (0, 0)),
        ],
        out_specs=pl.BlockSpec((tb, OUT_PAD), lambda i: (i, 0)),
        compiler_params=pltpu.CompilerParams(
            # Batch tiles are independent -> megacore-shardable on v7x.
            dimension_semantics=("parallel",)),
        cost_estimate=pl.CostEstimate(
            flops=flops, transcendentals=0, bytes_accessed=bytes_accessed),
    )(x_p, w1_p, b1_p, w2_p, b2_p)

    return out_padded[:B, :NUM_CLASSES]


def init_params(key):
    # PyTorch nn.Linear default init: U(-1/sqrt(fan_in), 1/sqrt(fan_in)).
    k1, k2, k3, k4 = jax.random.split(key, 4)
    bound1 = 1.0 / jnp.sqrt(INPUT_SIZE)
    bound2 = 1.0 / jnp.sqrt(HIDDEN_SIZE)
    w1 = jax.random.uniform(k1, (INPUT_SIZE, HIDDEN_SIZE), jnp.float32, -bound1, bound1)
    b1 = jax.random.uniform(k2, (1, HIDDEN_SIZE), jnp.float32, -bound1, bound1)
    w2 = jax.random.uniform(k3, (HIDDEN_SIZE, NUM_CLASSES), jnp.float32, -bound2, bound2)
    b2 = jax.random.uniform(k4, (1, NUM_CLASSES), jnp.float32, -bound2, bound2)
    return w1, b1, w2, b2


if __name__ == "__main__":
    key = jax.random.PRNGKey(0)
    pkey, xkey = jax.random.split(key)
    w1, b1, w2, b2 = init_params(pkey)

    # One-time layout prep (hoisted out of the per-call path).
    params = prepare_params(w1, b1, w2, b2)

    batch = 8
    x = jax.random.normal(xkey, (batch, INPUT_SIZE), jnp.float32)

    out = simple_mlp_forward(x, params)
    out = jax.block_until_ready(out)
    assert out.shape == (batch, NUM_CLASSES)

    # Reference that mimics the kernel's numerics (bf16 layer-1 inputs, f32 layer 2).
    f32 = jnp.float32
    xr = x.astype(jnp.bfloat16).astype(f32)
    w1r = w1.astype(jnp.bfloat16).astype(f32)
    h_ref = jnp.maximum(xr @ w1r + b1, 0.0)
    ref = h_ref @ w2 + b2
    assert jnp.allclose(out, ref, atol=2e-2, rtol=2e-2), \
        f"max abs err {jnp.max(jnp.abs(out - ref))}"

    # Sanity vs. the pure-f32 PyTorch-equivalent forward (loose, bf16 rounding in layer 1).
    ref_f32 = jnp.maximum(x @ w1 + b1, 0.0) @ w2 + b2
    assert jnp.max(jnp.abs(out - ref_f32)) < 0.1

    print("KERNEL_OK")
</pallas_src>

<mosaic_0001>
module attributes {stable_mosaic.version = 11 : i64} {
  func.func @mlp_kernel(%arg0: i32, %arg1: memref<16x784xf32, #tpu.memory_space<vmem>>, %arg2: memref<784x256xbf16, #tpu.memory_space<vmem>>, %arg3: memref<1x256xf32, #tpu.memory_space<vmem>>, %arg4: memref<256x128xf32, #tpu.memory_space<vmem>>, %arg5: memref<1x128xf32, #tpu.memory_space<vmem>>, %arg6: memref<16x128xf32, #tpu.memory_space<vmem>>) attributes {dimension_semantics = [#tpu.dimension_semantics<parallel>], iteration_bounds = array<i64: 1>, scalar_prefetch = 0 : i64, scratch_operands = 0 : i64, tpu.core_type = #tpu.core_type<tc>, window_params = [{transform_indices = @transform_0, window_bounds = array<i64: 16, 784>}, {pipeline_mode = #tpu.pipeline_mode<synchronous>, transform_indices = @transform_1, window_bounds = array<i64: 784, 256>}, {pipeline_mode = #tpu.pipeline_mode<synchronous>, transform_indices = @transform_2, window_bounds = array<i64: 1, 256>}, {pipeline_mode = #tpu.pipeline_mode<synchronous>, transform_indices = @transform_3, window_bounds = array<i64: 256, 128>}, {pipeline_mode = #tpu.pipeline_mode<synchronous>, transform_indices = @transform_4, window_bounds = array<i64: 1, 128>}, {transform_indices = @transform_5, window_bounds = array<i64: 16, 128>}]} {
    %c0 = arith.constant 0 : index
    %c0_0 = arith.constant 0 : index
    %0 = vector.load %arg1[%c0, %c0_0] : memref<16x784xf32, #tpu.memory_space<vmem>>, vector<16x784xf32>
    %1 = arith.truncf %0 : vector<16x784xf32> to vector<16x784xbf16>
    %c0_1 = arith.constant 0 : index
    %c0_2 = arith.constant 0 : index
    %2 = vector.load %arg2[%c0_1, %c0_2] : memref<784x256xbf16, #tpu.memory_space<vmem>>, vector<784x256xbf16>
    %cst = arith.constant dense<0.000000e+00> : vector<16x256xf32>
    %3 = tpu.matmul %1, %2, %cst {dimension_numbers = #tpu.dot_dimension_numbers<[1], [0], [0], [1], [0, 0, 1, 1], [], []>} : vector<16x784xbf16>, vector<784x256xbf16>, vector<16x256xf32> -> vector<16x256xf32>
    %c0_3 = arith.constant 0 : index
    %c0_4 = arith.constant 0 : index
    %4 = vector.load %arg3[%c0_3, %c0_4] : memref<1x256xf32, #tpu.memory_space<vmem>>, vector<1x256xf32>
    %5 = vector.broadcast %4 : vector<1x256xf32> to vector<16x256xf32>
    %6 = arith.addf %3, %5 : vector<16x256xf32>
    %cst_5 = arith.constant 0.000000e+00 : f32
    %7 = vector.broadcast %cst_5 : f32 to vector<16x256xf32>
    %8 = arith.maximumf %6, %7 : vector<16x256xf32>
    %c0_6 = arith.constant 0 : index
    %c0_7 = arith.constant 0 : index
    %9 = vector.load %arg4[%c0_6, %c0_7] : memref<256x128xf32, #tpu.memory_space<vmem>>, vector<256x128xf32>
    %cst_8 = arith.constant dense<0.000000e+00> : vector<16x128xf32>
    %10 = tpu.matmul %8, %9, %cst_8 {dimension_numbers = #tpu.dot_dimension_numbers<[1], [0], [0], [1], [0, 0, 1, 1], [], []>} : vector<16x256xf32>, vector<256x128xf32>, vector<16x128xf32> -> vector<16x128xf32>
    %c0_9 = arith.constant 0 : index
    %c0_10 = arith.constant 0 : index
    %11 = vector.load %arg5[%c0_9, %c0_10] : memref<1x128xf32, #tpu.memory_space<vmem>>, vector<1x128xf32>
    %12 = vector.broadcast %11 : vector<1x128xf32> to vector<16x128xf32>
    %13 = arith.addf %10, %12 : vector<16x128xf32>
    %c0_11 = arith.constant 0 : index
    %c0_12 = arith.constant 0 : index
    %14 = vector.load %arg6[%c0_11, %c0_12] : memref<16x128xf32, #tpu.memory_space<vmem>>, vector<16x128xf32>
    tpu.vector_store %arg6[%c0_11, %c0_12], %13 {strides = array<i32>} : memref<16x128xf32, #tpu.memory_space<vmem>>, vector<16x128xf32>,
    return
  }
  func.func @transform_0(%arg0: i32) -> (i32, i32) {
    %c0_i32 = arith.constant 0 : i32
    %c0_i32_0 = arith.constant 0 : i32
    return %arg0, %c0_i32 : i32, i32
  }
  func.func @transform_1(%arg0: i32) -> (i32, i32) {
    %c0_i32 = arith.constant 0 : i32
    %c0_i32_0 = arith.constant 0 : i32
    %c0_i32_1 = arith.constant 0 : i32
    return %c0_i32, %c0_i32_0 : i32, i32
  }
  func.func @transform_2(%arg0: i32) -> (i32, i32) {
    %c0_i32 = arith.constant 0 : i32
    %c0_i32_0 = arith.constant 0 : i32
    %c0_i32_1 = arith.constant 0 : i32
    return %c0_i32, %c0_i32_0 : i32, i32
  }
  func.func @transform_3(%arg0: i32) -> (i32, i32) {
    %c0_i32 = arith.constant 0 : i32
    %c0_i32_0 = arith.constant 0 : i32
    %c0_i32_1 = arith.constant 0 : i32
    return %c0_i32, %c0_i32_0 : i32, i32
  }
  func.func @transform_4(%arg0: i32) -> (i32, i32) {
    %c0_i32 = arith.constant 0 : i32
    %c0_i32_0 = arith.constant 0 : i32
    %c0_i32_1 = arith.constant 0 : i32
    return %c0_i32, %c0_i32_0 : i32, i32
  }
  func.func @transform_5(%arg0: i32) -> (i32, i32) {
    %c0_i32 = arith.constant 0 : i32
    %c0_i32_0 = arith.constant 0 : i32
    return %arg0, %c0_i32 : i32, i32
  }
}

</mosaic_0001>

<bundles_post_ra>
// kernel: tpu_custom_call.1
= control target key start
LH: loop header
LB: loop body
LE: loop exit
PB: predicated region body
PF: predicated region fallthrough
CT: control target
= control target key end

     0   :  { %10 = vsyncpa [#allocation3], 0  ;;  %s1536_s0 = inlined_call_operand.hbm [shape: f32[16,784], index: 0, kind: input, shape index: {}]   ;;  %s1537_s1 = inlined_call_operand.hbm [shape: bf16[784,256], index: 1, kind: input, shape index: {}]   ;;  %s1538_s2 = inlined_call_operand.vmem [shape: f32[1,256], index: 2, kind: input, shape index: {}]   ;;  %s1539_s3 = inlined_call_operand.hbm [shape: f32[256,128], index: 3, kind: input, shape index: {}]   ;;  %s1540_s4 = inlined_call_operand.vmem [shape: f32[1,128], index: 4, kind: input, shape index: {}]   ;;  %s1541_s5 = inlined_call_operand.hbm [shape: f32[16,128], index: 5, kind: output, shape index: {}]  }
   0x1   :  { %11 = vsyncpa [#allocation6], 0 }
   0x2   :  { %12 = vsyncpa [#allocation4], 0  ;;  %s1434_s18 = smov [#allocation5]   ;;  %s1340_s22 = scalar_lea.hbm %s1537_s1, 12544 }
   0x3   :  { %s30_s19 = sshll.u32 %s1434_s18, 4  ;;  %p1341_p0 = scmp.ne.s32.totalorder %s1537_s1, %s1340_s22  ;;  %s31_s19 = int_to_ptr.vmem [resolvable:$true] %s30_s19 }
   0x4   :  { %p1344_p1 = scmp.lt.u32.totalorder %s1340_s22, %s1537_s1 }
   0x6   :  { %p1346_p2 = pnand %p1344_p1, %p1341_p0 }
   0x8   :  { %1349 = shalt.err (!%p1346_p2)
}
   0x9   :  { %s1350_s27 = scalar_lea.vmem %s31_s19, 12544  ;;  %p1355_p4 = scmp.lt.s32.totalorder %s31_s19, %s31_s19 }
   0xa   :  { %p1351_p3 = scmp.ne.s32.totalorder %s31_s19, %s1350_s27  ;;  %p1356_p5 = scmp.lt.s32.totalorder %s1350_s27, %s1350_s27 }
   0xc   :  { %p1357_p6 = por %p1356_p5, %p1355_p4 }
   0xe   :  { %p1358_p7 = pnand %p1357_p6, %p1351_p3 }
  0x10   :  { %1361 = shalt.err (!%p1358_p7)
}
  0x11   :  { %s1435_s28 = smov 128   ;;  %s1436_s29 = smov 8  }
  0x12   :  { %36 = dma.hbm_to_vmem [thread:$0]  %s1537_s1, 12544, %s31_s19, [#allocation6], %s1435_s28, %s1435_s28, %s1436_s29  }
  0x13   :  { %s1437_s7 = smov [#allocation2]   ;;  %s1362_s11 = scalar_lea.hbm %s1536_s0, 1792 }
  0x14   :  { %s18_s8 = sshll.u32 %s1437_s7, 4  ;;  %p1363_p8 = scmp.ne.s32.totalorder %s1536_s0, %s1362_s11  ;;  %s19_s8 = int_to_ptr.vmem [resolvable:$true] %s18_s8 }
  0x15   :  { %p1366_p9 = scmp.lt.u32.totalorder %s1362_s11, %s1536_s0 }
  0x17   :  { %p1368_p10 = pnand %p1366_p9, %p1363_p8 }
  0x19   :  { %1371 = shalt.err (!%p1368_p10)
}
  0x1a   :  { %s1372_s16 = scalar_lea.vmem %s19_s8, 1792  ;;  %p1377_p12 = scmp.lt.s32.totalorder %s19_s8, %s19_s8 }
  0x1b   :  { %p1373_p11 = scmp.ne.s32.totalorder %s19_s8, %s1372_s16  ;;  %p1378_p13 = scmp.lt.s32.totalorder %s1372_s16, %s1372_s16 }
  0x1d   :  { %p1379_p0 = por %p1378_p13, %p1377_p12 }
  0x1f   :  { %p1380_p1 = pnand %p1379_p0, %p1373_p11 }
  0x21   :  { %1383 = shalt.err (!%p1380_p1)
}
  0x22   :  { %s1438_s1 = smov 896   ;;  %s1439_s17 = smov 56  }
  0x23   :  { %24 = dma.hbm_to_vmem [thread:$0]  %s1536_s0, 1792, %s19_s8, [#allocation3], %s1438_s1, %s1438_s1, %s1439_s17  }
  0x24   :  { %s1440_s20 = smov [#allocation7]   ;;  %s1384_s24 = scalar_lea.hbm %s1539_s3, 4096 }
  0x25   :  { %s44_s21 = sshll.u32 %s1440_s20, 4  ;;  %p1385_p2 = scmp.ne.s32.totalorder %s1539_s3, %s1384_s24  ;;  %s45_s21 = int_to_ptr.vmem [resolvable:$true] %s44_s21 }
  0x26   :  { %p1388_p3 = scmp.lt.u32.totalorder %s1384_s24, %s1539_s3 }
  0x28   :  { %p1390_p4 = pnand %p1388_p3, %p1385_p2 }
  0x2a   :  { %1393 = shalt.err (!%p1390_p4)
}
  0x2b   :  { %s1394_s6 = scalar_lea.vmem %s45_s21, 4096  ;;  %p1399_p6 = scmp.lt.s32.totalorder %s45_s21, %s45_s21 }
  0x2c   :  { %p1395_p5 = scmp.ne.s32.totalorder %s45_s21, %s1394_s6  ;;  %p1400_p7 = scmp.lt.s32.totalorder %s1394_s6, %s1394_s6 }
  0x2e   :  { %p1401_p8 = por %p1400_p7, %p1399_p6 }
  0x30   :  { %p1402_p9 = pnand %p1401_p8, %p1395_p5 }
  0x32   :  { %1405 = shalt.err (!%p1402_p9)
}
  0x33   :  { %50 = dma.hbm_to_vmem [thread:$0]  %s1539_s3, 4096, %s45_s21, [#allocation6], %s1435_s28, %s1435_s28, %s1436_s29  }
  0x34   :  { %1428 = dma.done.wait [#allocation3], 1792  }
  0x35   :  { %1429 = vsyncadd [#allocation3], 4294965504 }
  0x36   :  { %1430 = dma.done.wait [#allocation6], 16640  }
  0x37   :  { %1431 = vsyncadd [#allocation6], 4294950656  ;;  %v1193_v0 = vld [vmem:[#allocation5 + $0x104] ss:$8 sps:$4 sm:$0xff]   ;;  %v1195_v1 = vld [vmem:[#allocation5 + $0x100] ss:$8 sps:$4 sm:$0xff]  }
  0x38   :  { %731 = vmatprep.subr.bf16.mxu0 %v1193_v0  ;;  %v1196_v2 = vld [vmem:[#allocation5 + $0x114] ss:$8 sps:$4 sm:$0xff]   ;;  %v1198_v3 = vld [vmem:[#allocation5 + $0x110] ss:$8 sps:$4 sm:$0xff]   ;;  %v1199_v4 = vld [vmem:[#allocation5 + $0x124] ss:$8 sps:$4 sm:$0xff]  }
  0x39   :  { %732 = vmatpush1.bf16.msra.mxu0 %v1195_v1  ;;  %v1201_v5 = vld [vmem:[#allocation5 + $0x120] ss:$8 sps:$4 sm:$0xff]   ;;  %v1202_v6 = vld [vmem:[#allocation5 + $0x134] ss:$8 sps:$4 sm:$0xff]   ;;  %v1204_v7 = vld [vmem:[#allocation5 + $0x130] ss:$8 sps:$4 sm:$0xff]  }
  0x3a   :  { %733 = vmatprep.subr.bf16.mxu0 %v1196_v2  ;;  %v1205_v8 = vld [vmem:[#allocation5 + $0x144] ss:$8 sps:$4 sm:$0xff]   ;;  %v1207_v9 = vld [vmem:[#allocation5 + $0x140] ss:$8 sps:$4 sm:$0xff]   ;;  %v1208_v10 = vld [vmem:[#allocation5 + $0x154] ss:$8 sps:$4 sm:$0xff]  }
  0x3b   :  { %v1210_v11 = vld [vmem:[#allocation5 + $0x150] ss:$8 sps:$4 sm:$0xff]   ;;  %v1235_v12 = vld [vmem:[#allocation5 + $0x4] ss:$8 sps:$4 sm:$0xff]   ;;  %v1237_v13 = vld [vmem:[#allocation5] ss:$8 sps:$4 sm:$0xff]  }
  0x3c   :  { %v1211_v14 = vld [vmem:[#allocation5 + $0x164] ss:$8 sps:$4 sm:$0xff]   ;;  %688 = vmatprep.subr.bf16.mxu1 %v1235_v12  ;;  %v1241_v15 = vld [vmem:[#allocation5 + $0x14] ss:$8 sps:$4 sm:$0xff]   ;;  %v1243_v16 = vld [vmem:[#allocation5 + $0x10] ss:$8 sps:$4 sm:$0xff]  }
  0x3d   :  { %734 = vmatpush1.bf16.msra.mxu0 %v1198_v3  ;;  %689 = vmatpush1.bf16.msra.mxu1 %v1237_v13  ;;  %v1213_v17 = vld [vmem:[#allocation5 + $0x160] ss:$8 sps:$4 sm:$0xff]   ;;  %v1214_v18 = vld [vmem:[#allocation5 + $0x174] ss:$8 sps:$4 sm:$0xff]   ;;  %v1247_v19 = vld [vmem:[#allocation5 + $0x24] ss:$8 sps:$4 sm:$0xff]  }
  0x3e   :  { %735 = vmatprep.subr.bf16.mxu0 %v1199_v4  ;;  %690 = vmatprep.subr.bf16.mxu1 %v1241_v15  ;;  %v66_v20 = vld [vmem:[#allocation2 + $0x18] sm:$0xff]  ;;  %v73_v21 = vld [vmem:[#allocation2 + $0x50] sm:$0xff]  ;;  %v1216_v24 = vld [vmem:[#allocation5 + $0x170] ss:$8 sps:$4 sm:$0xff]   ;;  %vm684_vm0 = vcmask 130048   ;;  %s1442_s10 = smov [#allocation8]  }
  0x3f   :  { %v1249_v22 = vld [vmem:[#allocation5 + $0x20] ss:$8 sps:$4 sm:$0xff]   ;;  %v80_v23 = vpack.c.bf16 %v73_v21, %v66_v20  ;;  %v1217_v25 = vld [vmem:[#allocation5 + $0x184] ss:$8 sps:$4 sm:$0xff]   ;;  %v1253_v26 = vld [vmem:[#allocation5 + $0x34] ss:$8 sps:$4 sm:$0xff]  }
  0x40   :  { %v1255_v27 = vld [vmem:[#allocation5 + $0x30] ss:$8 sps:$4 sm:$0xff]   ;;  %v1219_v28 = vld [vmem:[#allocation5 + $0x180] ss:$8 sps:$4 sm:$0xff]   ;;  %v1259_v29 = vld [vmem:[#allocation5 + $0x44] ss:$8 sps:$4 sm:$0xff]  }
  0x41   :  { %736 = vmatpush1.bf16.msra.mxu0 %v1201_v5  ;;  %691 = vmatpush1.bf16.msra.mxu1 %v1243_v16  ;;  %v1220_v30 = vld [vmem:[#allocation5 + $0x194] ss:$8 sps:$4 sm:$0xff]   ;;  %v1261_v31 = vld [vmem:[#allocation5 + $0x40] ss:$8 sps:$4 sm:$0xff]   ;;  %v1222_v32 = vld [vmem:[#allocation5 + $0x190] ss:$8 sps:$4 sm:$0xff]  }
  0x42   :  { %737 = vmatprep.subr.bf16.mxu0 %v1202_v6  ;;  %692 = vmatprep.subr.bf16.mxu1 %v1247_v19  ;;  %v1265_v33 = vld [vmem:[#allocation5 + $0x54] ss:$8 sps:$4 sm:$0xff]   ;;  %v1223_v34 = vld [vmem:[#allocation5 + $0x1a4] ss:$8 sps:$4 sm:$0xff]   ;;  %v1267_v35 = vld [vmem:[#allocation5 + $0x50] ss:$8 sps:$4 sm:$0xff]  }
  0x43   :  { %763 = vmatprep.mubr.bf16.mxu0 %v80_v23  ;;  %v1225_v36 = vld [vmem:[#allocation5 + $0x1a0] ss:$8 sps:$4 sm:$0xff]   ;;  %v1271_v37 = vld [vmem:[#allocation5 + $0x64] ss:$8 sps:$4 sm:$0xff]   ;;  %v1226_v38 = vld [vmem:[#allocation5 + $0x1b4] ss:$8 sps:$4 sm:$0xff]  }
  0x44   :  { %v1273_v39 = vld [vmem:[#allocation5 + $0x60] ss:$8 sps:$4 sm:$0xff]   ;;  %v1228_v40 = vld [vmem:[#allocation5 + $0x1b0] ss:$8 sps:$4 sm:$0xff]   ;;  %v1277_v41 = vld [vmem:[#allocation5 + $0x74] ss:$8 sps:$4 sm:$0xff]  }
  0x45   :  { %738 = vmatpush1.bf16.msra.mxu0 %v1204_v7  ;;  %693 = vmatpush1.bf16.msra.mxu1 %v1249_v22  ;;  %v1229_v42 = vld [vmem:[#allocation5 + $0x1c4] ss:$8 sps:$4 sm:$0xff]   ;;  %v1279_v43 = vld [vmem:[#allocation5 + $0x70] ss:$8 sps:$4 sm:$0xff]   ;;  %v1231_v44 = vld [vmem:[#allocation5 + $0x1c0] ss:$8 sps:$4 sm:$0xff]  }
  0x46   :  { %739 = vmatprep.subr.bf16.mxu0 %v1205_v8  ;;  %694 = vmatprep.subr.bf16.mxu1 %v1253_v26  ;;  %v1283_v45 = vld [vmem:[#allocation5 + $0x84] ss:$8 sps:$4 sm:$0xff]   ;;  %v1232_v46 = vld [vmem:[#allocation5 + $0x1d4] ss:$8 sps:$4 sm:$0xff]   ;;  %v1285_v47 = vld [vmem:[#allocation5 + $0x80] ss:$8 sps:$4 sm:$0xff]  }
  0x47   :  { %v1234_v48 = vld [vmem:[#allocation5 + $0x1d0] ss:$8 sps:$4 sm:$0xff]   ;;  %v1289_v49 = vld [vmem:[#allocation5 + $0x94] ss:$8 sps:$4 sm:$0xff]   ;;  %v1238_v50 = vld [vmem:[#allocation5 + $0x1e4] ss:$8 sps:$4 sm:$0xff]  }
  0x48   :  { %v1291_v51 = vld [vmem:[#allocation5 + $0x90] ss:$8 sps:$4 sm:$0xff]   ;;  %v1240_v52 = vld [vmem:[#allocation5 + $0x1e0] ss:$8 sps:$4 sm:$0xff]   ;;  %v1295_v53 = vld [vmem:[#allocation5 + $0xa4] ss:$8 sps:$4 sm:$0xff]  }
  0x49   :  { %740 = vmatpush1.bf16.msra.mxu0 %v1207_v9  ;;  %695 = vmatpush1.bf16.msra.mxu1 %v1255_v27  ;;  %v1244_v54 = vld [vmem:[#allocation5 + $0x1f4] ss:$8 sps:$4 sm:$0xff]   ;;  %v1246_v55 = vld [vmem:[#allocation5 + $0x1f0] ss:$8 sps:$4 sm:$0xff]   ;;  %v65_v56 = vld [vmem:[#allocation2 + $0x10] sm:$0xff]  ;;  %s985_s11 = sshll.u32 %s1442_s10, 4  ;;  %s986_s11 = int_to_ptr.vmem [resolvable:$true] %s985_s11 }
  0x4a   :  { %741 = vmatprep.subr.bf16.mxu0 %v1208_v10  ;;  %696 = vmatprep.subr.bf16.mxu1 %v1259_v29  ;;  %v1297_v57 = vld [vmem:[#allocation5 + $0xa0] ss:$8 sps:$4 sm:$0xff]   ;;  %v72_v58 = vld [vmem:[#allocation2 + $0x48] sm:$0xff]  ;;  %v1252_v60 = vld [vmem:[#allocation5 + $0x204] ss:$8 sps:$4 sm:$0xff]   ;;  %s1406_s12 = scalar_lea.vmem %s986_s11, 256  ;;  %p1411_p11 = scmp.lt.s32.totalorder %s986_s11, %s986_s11 }
  0x4b   :  { %v1301_v59 = vld [vmem:[#allocation5 + $0xb4] ss:$8 sps:$4 sm:$0xff]   ;;  %v79_v61 = vpack.c.bf16 %v72_v58, %v65_v56  ;;  %v1303_v62 = vld [vmem:[#allocation5 + $0xb0] ss:$8 sps:$4 sm:$0xff]   ;;  %v1250_v0 = vld [vmem:[#allocation5 + $0x200] ss:$8 sps:$4 sm:$0xff]   ;;  %p1407_p10 = scmp.ne.s32.totalorder %s986_s11, %s1406_s12  ;;  %p1412_p12 = scmp.lt.s32.totalorder %s1406_s12, %s1406_s12 }
  0x4c   :  { %v64_v63 = vld [vmem:[#allocation2 + $0x8] sm:$0xff]  ;;  %v1307_v1 = vld [vmem:[#allocation5 + $0xc4] ss:$8 sps:$4 sm:$0xff]   ;;  %v71_v2 = vld [vmem:[#allocation2 + $0x40] sm:$0xff] }
  0x4d   :  { %742 = vmatpush1.bf16.msra.mxu0 %v1210_v11  ;;  %697 = vmatpush1.bf16.msra.mxu1 %v1261_v31  ;;  %v1258_v3 = vld [vmem:[#allocation5 + $0x214] ss:$8 sps:$4 sm:$0xff]   ;;  %v78_v4 = vpack.c.bf16 %v71_v2, %v64_v63  ;;  %v1309_v5 = vld [vmem:[#allocation5 + $0xc0] ss:$8 sps:$4 sm:$0xff]   ;;  %v1256_v6 = vld [vmem:[#allocation5 + $0x210] ss:$8 sps:$4 sm:$0xff]   ;;  %p1413_p13 = por %p1412_p12, %p1411_p11 }
  0x4e   :  { %743 = vmatprep.subr.bf16.mxu0 %v1211_v14  ;;  %698 = vmatprep.subr.bf16.mxu1 %v1265_v33  ;;  %v1313_v7 = vld [vmem:[#allocation5 + $0xd4] ss:$8 sps:$4 sm:$0xff]   ;;  %v1264_v8 = vld [vmem:[#allocation5 + $0x224] ss:$8 sps:$4 sm:$0xff]   ;;  %v1315_v12 = vld [vmem:[#allocation5 + $0xd0] ss:$8 sps:$4 sm:$0xff]  }
  0x4f   :  { %720 = vmatprep.mubr.bf16.mxu1 %v78_v4  ;;  %v68_v9 = vld [vmem:[#allocation2 + $0x28] sm:$0xff]  ;;  %v75_v10 = vld [vmem:[#allocation2 + $0x60] sm:$0xff]  ;;  %v1262_v13 = vld [vmem:[#allocation5 + $0x220] ss:$8 sps:$4 sm:$0xff]   ;;  %v1441_v33 = vmov 0   ;;  %p1414_p0 = pnand %p1413_p13, %p1407_p10 }
  0x50   :  { %v82_v11 = vpack.c.bf16 %v75_v10, %v68_v9  ;;  %v1319_v14 = vld [vmem:[#allocation5 + $0xe4] ss:$8 sps:$4 sm:$0xff]   ;;  %v1270_v15 = vld [vmem:[#allocation5 + $0x234] ss:$8 sps:$4 sm:$0xff]   ;;  %v1321_v16 = vld [vmem:[#allocation5 + $0xe0] ss:$8 sps:$4 sm:$0xff]  }
  0x51   :  { %744 = vmatpush1.bf16.msra.mxu0 %v1213_v17  ;;  %699 = vmatpush1.bf16.msra.mxu1 %v1267_v35  ;;  %v1268_v17 = vld [vmem:[#allocation5 + $0x230] ss:$8 sps:$4 sm:$0xff]   ;;  %v1276_v19 = vld [vmem:[#allocation5 + $0x244] ss:$8 sps:$4 sm:$0xff]   ;;  %v1274_v23 = vld [vmem:[#allocation5 + $0x240] ss:$8 sps:$4 sm:$0xff]  }
  0x52   :  { %745 = vmatprep.subr.bf16.mxu0 %v1214_v18  ;;  %700 = vmatprep.subr.bf16.mxu1 %v1271_v37  ;;  %v1325_v18 = vld [vmem:[#allocation5 + $0xf4] ss:$8 sps:$4 sm:$0xff]   ;;  %v1327_v20 = vld [vmem:[#allocation5 + $0xf0] ss:$8 sps:$4 sm:$0xff]   ;;  %v70_v22 = vld [vmem:[#allocation2 + $0x38] sm:$0xff] }
  0x53   :  { %v63_v21 = vld [vmem:[#allocation2] sm:$0xff]  ;;  %v881_v27 = vld [vmem:[#allocation7 + $0x88] sm:$0xff]  ;;  %v1334_v29 = vld [vmem:[#allocation5 + $0x300] ss:$8 sps:$4 sm:$0xff]  }
  0x54   :  { %v880_v26 = vld [vmem:[#allocation7 + $0x80] sm:$0xff]  ;;  %v76_v35 = vld [vmem:[#allocation2 + $0x68] sm:$0xff]  ;;  %v887_v58 = vld [vmem:[#allocation7 + $0xb8] sm:$0xff] }
  0x55   :  { %746 = vmatpush1.bf16.msra.mxu0 %v1216_v24  ;;  %701 = vmatpush1.bf16.msra.mxu1 %v1273_v39  ;;  %v1336_v24 = vld [vmem:[#allocation5 + $0x304] ss:$8 sps:$4 sm:$0xff]   ;;  %v1136_v31 = vpack.c.bf16 %v881_v27, %v880_v26  ;;  %v864_v37 = vld [vmem:[#allocation7] sm:$0xff]  ;;  %v1310_v2 = vld [vmem:[#allocation5 + $0x2a0] ss:$8 sps:$4 sm:$0xff]  }
  0x56   :  { %747 = vmatprep.subr.bf16.mxu0 %v1217_v25  ;;  %702 = vmatprep.subr.bf16.mxu1 %v1277_v41  ;;  %v1282_v25 = vld [vmem:[#allocation5 + $0x254] ss:$8 sps:$4 sm:$0xff]   ;;  %v883_v41 = vld [vmem:[#allocation7 + $0x98] sm:$0xff]  ;;  %v1316_v4 = vld [vmem:[#allocation5 + $0x2b0] ss:$8 sps:$4 sm:$0xff]  }
  0x57   :  { %v1294_v39 = vld [vmem:[#allocation5 + $0x274] ss:$8 sps:$4 sm:$0xff]   ;;  %v871_v63 = vld [vmem:[#allocation7 + $0x38] sm:$0xff] }
  0x58   :  { %v1306_v56 = vld [vmem:[#allocation5 + $0x294] ss:$8 sps:$4 sm:$0xff]   ;;  %v1333_v9 = vld [vmem:[#allocation5 + $0x2e4] ss:$8 sps:$4 sm:$0xff]   ;;  %v1331_v10 = vld [vmem:[#allocation5 + $0x2e0] ss:$8 sps:$4 sm:$0xff]  }
  0x59   :  { %748 = vmatpush1.bf16.msra.mxu0 %v1219_v28  ;;  %703 = vmatpush1.bf16.msra.mxu1 %v1279_v43  ;;  %v77_v28 = vpack.c.bf16 %v70_v22, %v63_v21  ;;  %v890_v21 = vld [vmem:[#allocation7 + $0xd0] sm:$0xff] }
  0x5a   :  { %749 = vmatprep.subr.bf16.mxu0 %v1220_v30  ;;  %704 = vmatprep.subr.bf16.mxu1 %v1283_v45  ;;  %v1280_v30 = vld [vmem:[#allocation5 + $0x250] ss:$8 sps:$4 sm:$0xff]  }
  0x5d   :  { %750 = vmatpush1.bf16.msra.mxu0 %v1222_v32  ;;  %705 = vmatpush1.bf16.msra.mxu1 %v1285_v47  ;;  %v1288_v32 = vld [vmem:[#allocation5 + $0x264] ss:$8 sps:$4 sm:$0xff]  }
  0x5e   :  { %751 = vmatprep.subr.bf16.mxu0 %v1223_v34  ;;  %706 = vmatprep.subr.bf16.mxu1 %v1289_v49  ;;  %v69_v34 = vld [vmem:[#allocation2 + $0x30] sm:$0xff]  ;;  %v867_v47 = vld [vmem:[#allocation7 + $0x18] sm:$0xff]  ;;  %v884_v49 = vld [vmem:[#allocation7 + $0xa0] sm:$0xff] }
  0x61   :  { %752 = vmatpush1.bf16.msra.mxu0 %v1225_v36  ;;  %707 = vmatpush1.bf16.msra.mxu1 %v1291_v51  ;;  %v1286_v36 = vld [vmem:[#allocation5 + $0x260] ss:$8 sps:$4 sm:$0xff]  }
  0x62   :  { %753 = vmatprep.subr.bf16.mxu0 %v1226_v38  ;;  %708 = vmatprep.subr.bf16.mxu1 %v1295_v53  ;;  %v865_v38 = vld [vmem:[#allocation7 + $0x8] sm:$0xff] }
  0x63   :  { %v1138_v43 = vpack.c.bf16 %v865_v38, %v864_v37  ;;  %v878_v37 = vld [vmem:[#allocation7 + $0x70] sm:$0xff]  ;;  %v879_v38 = vld [vmem:[#allocation7 + $0x78] sm:$0xff] }
  0x65   :  { %754 = vmatpush1.bf16.msra.mxu0 %v1228_v40  ;;  %709 = vmatpush1.bf16.msra.mxu1 %v1297_v57  ;;  %v882_v40 = vld [vmem:[#allocation7 + $0x90] sm:$0xff] }
  0x66   :  { %755 = vmatprep.subr.bf16.mxu0 %v1229_v42  ;;  %710 = vmatprep.subr.bf16.mxu1 %v1301_v59  ;;  %v83_v42 = vpack.c.bf16 %v76_v35, %v69_v34  ;;  %v1140_v45 = vpack.c.bf16 %v883_v41, %v882_v40  ;;  %v886_v57 = vld [vmem:[#allocation7 + $0xb0] sm:$0xff]  ;;  %v895_v35 = vld [vmem:[#allocation7 + $0xf8] sm:$0xff] }
  0x67   :  { %v894_v34 = vld [vmem:[#allocation7 + $0xf0] sm:$0xff] }
  0x69   :  { %756 = vmatpush1.bf16.msra.mxu0 %v1231_v44  ;;  %711 = vmatpush1.bf16.msra.mxu1 %v1303_v62  ;;  %v1292_v44 = vld [vmem:[#allocation5 + $0x270] ss:$8 sps:$4 sm:$0xff]   ;;  %v870_v62 = vld [vmem:[#allocation7 + $0x30] sm:$0xff] }
  0x6a   :  { %757 = vmatprep.subr.bf16.mxu0 %v1232_v46  ;;  %712 = vmatprep.subr.bf16.mxu1 %v1307_v1  ;;  %v866_v46 = vld [vmem:[#allocation7 + $0x10] sm:$0xff]  ;;  %v1150_v1 = vpack.c.bf16 %v871_v63, %v870_v62 }
  0x6b   :  { %v1142_v51 = vpack.c.bf16 %v867_v47, %v866_v46 }
  0x6d   :  { %758 = vmatpush1.bf16.msra.mxu0 %v1234_v48  ;;  %713 = vmatpush1.bf16.msra.mxu1 %v1309_v5  ;;  %v1300_v48 = vld [vmem:[#allocation5 + $0x284] ss:$8 sps:$4 sm:$0xff]  }
  0x6e   :  { %759 = vmatprep.subr.bf16.mxu0 %v1238_v50  ;;  %714 = vmatprep.subr.bf16.mxu1 %v1313_v7  ;;  %v885_v50 = vld [vmem:[#allocation7 + $0xa8] sm:$0xff]  ;;  %v1324_v5 = vld [vmem:[#allocation5 + $0x2c4] ss:$8 sps:$4 sm:$0xff]  }
  0x6f   :  { %v1144_v53 = vpack.c.bf16 %v885_v50, %v884_v49  ;;  %v1330_v7 = vld [vmem:[#allocation5 + $0x2d4] ss:$8 sps:$4 sm:$0xff]  }
  0x71   :  { %760 = vmatpush1.bf16.msra.mxu0 %v1240_v52  ;;  %715 = vmatpush1.bf16.msra.mxu1 %v1315_v12  ;;  %v1298_v52 = vld [vmem:[#allocation5 + $0x280] ss:$8 sps:$4 sm:$0xff]   ;;  %v1337_v12 = vld [vmem:[#allocation5 + $0x2f0] ss:$8 sps:$4 sm:$0xff]  }
  0x72   :  { %761 = vmatprep.subr.bf16.mxu0 %v1244_v54  ;;  %716 = vmatprep.subr.bf16.mxu1 %v1319_v14  ;;  %v868_v54 = vld [vmem:[#allocation7 + $0x20] sm:$0xff]  ;;  %v74_v14 = vld [vmem:[#allocation2 + $0x58] sm:$0xff] }
  0x75   :  { %762 = vmatpush1.bf16.msra.mxu0 %v1246_v55  ;;  %717 = vmatpush1.bf16.msra.mxu1 %v1321_v16  ;;  %v869_v55 = vld [vmem:[#allocation7 + $0x28] sm:$0xff]  ;;  %v888_v16 = vld [vmem:[#allocation7 + $0xc0] sm:$0xff] }
  0x76   :  { %774 = vmatprep.subr.bf16.mxu0 %v1252_v60  ;;  %718 = vmatprep.subr.bf16.mxu1 %v1325_v18  ;;  %v1146_v59 = vpack.c.bf16 %v869_v55, %v868_v54  ;;  %v1304_v60 = vld [vmem:[#allocation5 + $0x290] ss:$8 sps:$4 sm:$0xff]  }
  0x78   :  { %764 = vmatmul.mubr.bf16.vlgmr.msra.gmra.mrb[0].mxu0 %v79_v61  ;;  %v1148_v61 = vpack.c.bf16 %v887_v58, %v886_v57 }
  0x79   :  { %775 = vmatpush1.bf16.msra.mxu0 %v1250_v0  ;;  %806 = vmatprep.mubr.bf16.mxu0 %v82_v11  ;;  %v1312_v0 = vld [vmem:[#allocation5 + $0x2a4] ss:$8 sps:$4 sm:$0xff]   ;;  %v1339_v11 = vld [vmem:[#allocation5 + $0x2f4] ss:$8 sps:$4 sm:$0xff]  }
  0x7a   :  { %776 = vmatprep.subr.bf16.mxu0 %v1258_v3  ;;  %719 = vmatpush1.bf16.msra.mxu1 %v1327_v20  ;;  %v1318_v3 = vld [vmem:[#allocation5 + $0x2b4] ss:$8 sps:$4 sm:$0xff]  }
  0x7b   :  { %817 = vmatprep.subr.bf16.mxu1 %v1336_v24  ;;  %v873_v20 = vld [vmem:[#allocation7 + $0x48] sm:$0xff]  ;;  %v874_v24 = vld [vmem:[#allocation7 + $0x50] sm:$0xff] }
  0x7d   :  { %777 = vmatpush1.bf16.msra.mxu0 %v1256_v6  ;;  %721 = vmatmul.mubr.bf16.vlgmr.msra.gmra.mrb[0].mxu1 %v77_v28  ;;  %v1322_v6 = vld [vmem:[#allocation5 + $0x2c0] ss:$8 sps:$4 sm:$0xff]   ;;  %v892_v28 = vld [vmem:[#allocation7 + $0xe0] sm:$0xff] }
  0x7e   :  { %778 = vmatprep.subr.bf16.mxu0 %v1264_v8  ;;  %818 = vmatpush1.bf16.msra.mxu1 %v1334_v29  ;;  %v1328_v8 = vld [vmem:[#allocation5 + $0x2d0] ss:$8 sps:$4 sm:$0xff]  }
  0x7f   :  { %849 = vmatprep.mubr.bf16.mxu1 %v1441_v33  ;;  %1137 = vmatprep.subr.bf16.mxu1 %v1136_v31  ;;  %v893_v29 = vld [vmem:[#allocation7 + $0xe8] sm:$0xff]  ;;  %v876_v31 = vld [vmem:[#allocation7 + $0x60] sm:$0xff] }
  0x81   :  { %779 = vmatpush1.bf16.msra.mxu0 %v1262_v13  ;;  %v67_v13 = vld [vmem:[#allocation2 + $0x20] sm:$0xff] }
  0x82   :  { %780 = vmatprep.subr.bf16.mxu0 %v1270_v15  ;;  %v81_v15 = vpack.c.bf16 %v74_v14, %v67_v13 }
  0x85   :  { %781 = vmatpush1.bf16.msra.mxu0 %v1268_v17  ;;  %1096 = vmatmul.mubr.msk.bf16.vlgmr.msra.gmra.mrb[4].mxu1 %vm684_vm0, %v83_v42  ;;  %v889_v17 = vld [vmem:[#allocation7 + $0xc8] sm:$0xff] }
  0x86   :  { %782 = vmatprep.subr.bf16.mxu0 %v1276_v19  ;;  %1139 = vmatpush3.bf16.msra.mxu1 %v1138_v43  ;;  %v1152_v18 = vpack.c.bf16 %v889_v17, %v888_v16  ;;  %v872_v19 = vld [vmem:[#allocation7 + $0x40] sm:$0xff] }
  0x87   :  { %1141 = vmatprep.subr.bf16.mxu1 %v1140_v45  ;;  %v1154_v22 = vpack.c.bf16 %v873_v20, %v872_v19 }
  0x89   :  { %783 = vmatpush1.bf16.msra.mxu0 %v1274_v23  ;;  %v891_v23 = vld [vmem:[#allocation7 + $0xd8] sm:$0xff] }
  0x8a   :  { %784 = vmatprep.subr.bf16.mxu0 %v1282_v25  ;;  %1143 = vmatpush3.bf16.msra.mxu1 %v1142_v51  ;;  %v875_v25 = vld [vmem:[#allocation7 + $0x58] sm:$0xff]  ;;  %v1156_v26 = vpack.c.bf16 %v891_v23, %v890_v21  ;;  %v182_v51 = vld [vmem:[%s1538_s2] sm:$0x3] }
  0x8b   :  { %1145 = vmatprep.subr.bf16.mxu1 %v1144_v53  ;;  %v1158_v27 = vpack.c.bf16 %v875_v25, %v874_v24 }
  0x8d   :  { %785 = vmatpush1.bf16.msra.mxu0 %v1280_v30  ;;  %v1160_v30 = vpack.c.bf16 %v893_v29, %v892_v28 }
  0x8e   :  { %786 = vmatprep.subr.bf16.mxu0 %v1288_v32  ;;  %1147 = vmatpush3.bf16.msra.mxu1 %v1146_v59  ;;  %v877_v32 = vld [vmem:[#allocation7 + $0x68] sm:$0xff] }
  0x8f   :  { %1149 = vmatprep.subr.bf16.mxu1 %v1148_v61  ;;  %v1162_v33 = vpack.c.bf16 %v877_v32, %v876_v31 }
  0x91   :  { %787 = vmatpush1.bf16.msra.mxu0 %v1286_v36  ;;  %v1164_v36 = vpack.c.bf16 %v895_v35, %v894_v34 }
  0x92   :  { %788 = vmatprep.subr.bf16.mxu0 %v1294_v39  ;;  %1151 = vmatpush3.bf16.msra.mxu1 %v1150_v1  ;;  %v1166_v39 = vpack.c.bf16 %v879_v38, %v878_v37 }
  0x93   :  { %1153 = vmatprep.subr.bf16.mxu1 %v1152_v18 }
  0x95   :  { %789 = vmatpush1.bf16.msra.mxu0 %v1292_v44 }
  0x96   :  { %790 = vmatprep.subr.bf16.mxu0 %v1300_v48  ;;  %1155 = vmatpush3.bf16.msra.mxu1 %v1154_v22  ;;  %v184_v48 = vlaneseq }
  0x97   :  { %1157 = vmatprep.subr.bf16.mxu1 %v1156_v26 }
  0x98   :  { %v185_v49 = vshrl.u32 %v184_v48, 7 }
  0x99   :  { %791 = vmatpush1.bf16.msra.mxu0 %v1298_v52 }
  0x9a   :  { %792 = vmatprep.subr.bf16.mxu0 %v1306_v56  ;;  %1159 = vmatpush3.bf16.msra.mxu1 %v1158_v27  ;;  %v186_v50 = vsub.s32 0, %v185_v49  ;;  %v190_v52 = vsub.s32 1, %v185_v49 }
  0x9b   :  { %1161 = vmatprep.subr.bf16.mxu1 %v1160_v30 }
  0x9c   :  { %v187_v53 = vrot.slane %v182_v51, %v186_v50  ;;  %v191_v54 = vrot.slane %v182_v51, %v190_v52 }
  0x9d   :  { %793 = vmatpush1.bf16.msra.mxu0 %v1304_v60 }
  0x9e   :  { %794 = vmatprep.subr.bf16.mxu0 %v1312_v0  ;;  %1163 = vmatpush3.bf16.msra.mxu1 %v1162_v33 }
  0x9f   :  { %1165 = vmatprep.subr.bf16.mxu1 %v1164_v36 }
  0xa1   :  { %795 = vmatpush1.bf16.msra.mxu0 %v1310_v2 }
  0xa2   :  { %796 = vmatprep.subr.bf16.mxu0 %v1318_v3  ;;  %1167 = vmatpush3.bf16.msra.mxu1 %v1166_v39 }
  0xa5   :  { %797 = vmatpush1.bf16.msra.mxu0 %v1316_v4 }
  0xa6   :  { %798 = vmatprep.subr.bf16.mxu0 %v1324_v5 }
  0xa9   :  { %799 = vmatpush1.bf16.msra.mxu0 %v1322_v6 }
  0xaa   :  { %800 = vmatprep.subr.bf16.mxu0 %v1330_v7 }
  0xad   :  { %801 = vmatpush1.bf16.msra.mxu0 %v1328_v8 }
  0xae   :  { %802 = vmatprep.subr.bf16.mxu0 %v1333_v9 }
  0xb1   :  { %803 = vmatpush1.bf16.msra.mxu0 %v1331_v10 }
  0xb2   :  { %804 = vmatprep.subr.bf16.mxu0 %v1339_v11 }
  0xb5   :  { %805 = vmatpush1.bf16.msra.mxu0 %v1337_v12  ;;  %v1097_v12 = vld [vmem:[%s1540_s4] ss:$0 sm:$0xff] }
  0xb8   :  { %807 = vmatmul.mubr.bf16.vlgmr.msra.gmra.mrb[0].mxu0 %v81_v15 }
 0x150   :  { %v722_v40 = vpop.f32.mrb[0].mxu1 }
 0x151   :  { %v724_v41 = vpop.f32.mrb[1].mxu1  ;;  %v723_v55 = vadd.f32 %v722_v40, %v187_v53 }
 0x152   :  { %v726_v42 = vpop.f32.mrb[2].mxu1  ;;  %v725_v56 = vadd.f32 %v724_v41, %v191_v54 }
 0x153   :  { %v728_v43 = vpop.f32.mrb[3].mxu1  ;;  %v727_v58 = vadd.f32 %v726_v42, %v187_v53 }
 0x154   :  { %v729_v61 = vadd.f32 %v728_v43, %v191_v54 }
 0x158   :  { %v851_v44 = vpop.f32.mrb[4].mxu1 }
 0x159   :  { %v853_v45 = vpop.f32.mrb[5].mxu1 }
 0x15a   :  { %v855_v46 = vpop.f32.mrb[6].mxu1 }
 0x15b   :  { %v857_v47 = vpop.f32.mrb[7].mxu1 }
 0x18b   :  { %v808_v57 = vpop.f32.mrb[0].mxu0 }
 0x18c   :  { %v1169_v59 = vadd.f32 %v808_v57, %v723_v55  ;;  %v810_v60 = vpop.f32.mrb[1].mxu0 }
 0x18d   :  { %v1172_v62 = vadd.f32 %v810_v60, %v725_v56  ;;  %v812_v63 = vpop.f32.mrb[2].mxu0 }
 0x18e   :  { %v1170_v0 = vadd.f32 %v1169_v59, %v851_v44  ;;  %v1175_v1 = vadd.f32 %v812_v63, %v727_v58  ;;  %v814_v2 = vpop.f32.mrb[3].mxu0 }
 0x18f   :  { %v1173_v3 = vadd.f32 %v1172_v62, %v853_v45  ;;  %v1178_v4 = vadd.f32 %v814_v2, %v729_v61 }
 0x190   :  { %v1176_v5 = vadd.f32 %v1175_v1, %v855_v46  ;;  %v860_v8 = vmax.f32 %v1170_v0, 0.0 }
 0x191   :  { %v861_v6 = vmax.f32 %v1173_v3, 0.0  ;;  %v1179_v7 = vadd.f32 %v1178_v4, %v857_v47 }
 0x192   :  { %v862_v10 = vmax.f32 %v1176_v5, 0.0 }
 0x193   :  { %v863_v9 = vmax.f32 %v1179_v7, 0.0  ;;  %967 = vmatprep.mubr.f32.mxu1 %v861_v6 }
 0x194   :  { %968 = vmatmul.mubr.f32.vlgmr.msra.gmra.mrb[8].mxu1 %v860_v8 }
 0x195   :  { %972 = vmatprep.mubr.f32.mxu1 %v863_v9 }
 0x198   :  { %973 = vmatmul.mubr.f32.gmra.mrb[10].mxu1 %v862_v10 }
 0x267   :  { %v1130_v11 = vpop.f32.mrb[8].mxu1 }
 0x268   :  { %v1131_v13 = vpop.f32.mrb[9].mxu1 }
 0x269   :  { %v1132_v14 = vadd.f32 %v1131_v13, %v1130_v11 }
 0x26b   :  { %v970_v15 = vadd.f32 %v1132_v14, %v1097_v12  ;;  %v1133_v16 = vpop.f32.mrb[10].mxu1 }
 0x26c   :  { %v1134_v17 = vpop.f32.mrb[11].mxu1 }
 0x26d   :  { %978 = vst [vmem:[#allocation8] sm:$0xff] %v970_v15  ;;  %v1135_v18 = vadd.f32 %v1134_v17, %v1133_v16 }
 0x26f   :  { %v975_v19 = vadd.f32 %v1135_v18, %v1097_v12 }
 0x271   :  { %979 = vst [vmem:[#allocation8 + $0x8] sm:$0xff] %v975_v19 }
 0x272   :  { %1417 = shalt.err (!%p1414_p0)
}
 0x273   :  { %s1418_s14 = scalar_lea.hbm %s1541_s5, 256 }
 0x274   :  { %p1419_p1 = scmp.ne.s32.totalorder %s1541_s5, %s1418_s14  ;;  %p1422_p2 = scmp.lt.u32.totalorder %s1418_s14, %s1541_s5 }
 0x276   :  { %p1424_p3 = pnand %p1422_p2, %p1419_p1 }
 0x278   :  { %1427 = shalt.err (!%p1424_p3)
}
 0x279   :  { %991 = dma.vmem_to_hbm [thread:$0]  %s986_s11, 256, %s1541_s5, [#allocation4], %s1435_s28, %s1435_s28, %s1436_s29  }
 0x27a   :  { %1432 = dma.done.wait [#allocation4], 256  }
 0x27b   :  { %1433 = vsyncadd [#allocation4], 4294967040 }
 0x27c   :  { %995 = vsyncpa [#allocation3], 1 }
 0x27d   :  { %996 = vsyncpa [#allocation6], 1 }
 0x27e   :  { %997 = vsyncpa [#allocation4], 1 }

</bundles_post_ra>
